<compile_context>
chip_gen: v5e
topology: v5e:2x2
jax: 0.10.0
libtpu: 0.0.40
codegen_flags: <defaults>
</compile_context>

<pallas_src>
import functools

import jax
import jax.numpy as jnp
from jax import lax
from jax.experimental import pallas as pl
from jax.experimental.pallas import tpu as pltpu


def _round_up(n, m):
    return ((n + m - 1) // m) * m


def _encoder_kernel(x_ref, w1_ref, b1_ref, w2_ref, b2_ref, wh_ref, bh_ref,
                    out_ref, *, chunk, n_chunks):
    # Resident (grid-invariant) weights: read once per grid step.
    w1 = w1_ref[...]          # (IN_PAD, HPAD) bf16   (y-row folded in)
    b1 = b1_ref[...]          # (1, HPAD)      f32
    w2 = w2_ref[...]          # (HPAD, HPAD)   bf16
    b2 = b2_ref[...]          # (1, HPAD)      f32
    wh = wh_ref[...]          # (HPAD, OPAD)   bf16   [Wmu | Wlogvar]
    bh = bh_ref[...]          # (1, OPAD)      f32    [bmu | blogvar]

    def one_chunk(row):
        # fc1: relu( [x | y | 0] @ W1 + b1 )   (y handled by the matmul itself)
        x = x_ref[pl.ds(row, chunk), :].astype(jnp.bfloat16)
        h = jnp.dot(x, w1, preferred_element_type=jnp.float32)
        h = jnp.maximum(h + b1, 0.0)                       # f32 epilogue
        # fc2: relu( h @ W2 + b2 )
        h = jnp.dot(h.astype(jnp.bfloat16), w2,
                    preferred_element_type=jnp.float32)
        h = jnp.maximum(h + b2, 0.0)
        # fused mu|logvar head -> lane-dense (chunk, OPAD) store
        out_ref[pl.ds(row, chunk), :] = (
            jnp.dot(h.astype(jnp.bfloat16), wh,
                    preferred_element_type=jnp.float32) + bh
        ).astype(out_ref.dtype)

    if n_chunks == 1:
        one_chunk(0)
    else:
        # Sub-chunk the batch tile: gives the scheduler independent work so
        # MXU (next chunk's matmul) overlaps VPU (this chunk's epilogue).
        def body(c, carry):
            one_chunk(pl.multiple_of(c * chunk, chunk))
            return carry
        lax.fori_loop(0, n_chunks, body, None, unroll=True)


def encoder_forward(x, y, packed, *, out_dtype=jnp.float32,
                    return_packed=False):
    """x: (B, input_dim) f32, y: (B,) f32 -> (mu, logvar), each (B, latent_dim).

    With return_packed=True, returns the (B, out_pad) slab directly
    (mu = slab[:, :L], logvar = slab[:, L:2L]) so a fused downstream consumer
    can skip the extra HBM slab re-read.
    """
    B = x.shape[0]
    input_dim = packed["input_dim"]
    IN_PAD = packed["in_pad"]
    HPAD = packed["hidden_pad"]
    OPAD = packed["out_pad"]
    L = packed["latent_dim"]

    # Fold y into x: one (B, IN_PAD) f32 slab == cat(x, y.unsqueeze(1)) padded.
    xy = jnp.zeros((B, IN_PAD), jnp.float32)
    xy = xy.at[:, :input_dim].set(x.astype(jnp.float32))
    xy = xy.at[:, input_dim].set(y.astype(jnp.float32))

    # Batch tiling: >= 2 grid steps for non-trivial batches (v7x 2-TC sharding
    # via the "parallel" axis), capped at 1024 rows/tile (multiple of 8).
    if B <= 16:
        tile_b = B
    else:
        tile_b = min(1024, _round_up((B + 1) // 2, 8))
    grid = (pl.cdiv(B, tile_b),)

    # In-kernel sub-chunk size (multiple of 8 sublanes).
    if tile_b > 256 and tile_b % 256 == 0:
        chunk, n_chunks = 256, tile_b // 256
    else:
        chunk, n_chunks = tile_b, 1

    def row_spec(shape):              # batch-tiled arrays
        return pl.BlockSpec(shape, lambda i: (i, 0))

    def rep_spec(shape):              # resident weights (same block each step)
        return pl.BlockSpec(shape, lambda i: (0, 0))

    flops = 2 * B * (IN_PAD * HPAD + HPAD * HPAD + HPAD * OPAD)
    out_itemsize = jnp.dtype(out_dtype).itemsize
    bytes_accessed = (
        B * IN_PAD * 4 + B * OPAD * out_itemsize
        + (packed["w1"].size + packed["w2"].size + packed["wh"].size) * 2
        + (packed["b1"].size + packed["b2"].size + packed["bh"].size) * 4)

    kernel = functools.partial(_encoder_kernel, chunk=chunk, n_chunks=n_chunks)

    out = pl.pallas_call(
        kernel,
        out_shape=jax.ShapeDtypeStruct((B, OPAD), out_dtype),
        grid=grid,
        in_specs=[
            row_spec((tile_b, IN_PAD)),      # packed [x | y | 0]     (f32)
            rep_spec((IN_PAD, HPAD)),        # W1 (y-row folded in)   (bf16)
            rep_spec((1, HPAD)),             # b1                     (f32)
            rep_spec((HPAD, HPAD)),          # W2                     (bf16)
            rep_spec((1, HPAD)),             # b2                     (f32)
            rep_spec((HPAD, OPAD)),          # [Wmu | Wlogvar]        (bf16)
            rep_spec((1, OPAD)),             # [bmu | blogvar]        (f32)
        ],
        out_specs=row_spec((tile_b, OPAD)),
        compiler_params=pltpu.CompilerParams(
            dimension_semantics=("parallel",)),
        cost_estimate=pl.CostEstimate(
            flops=flops, transcendentals=0, bytes_accessed=bytes_accessed),
    )(xy, packed["w1"], packed["b1"], packed["w2"], packed["b2"],
      packed["wh"], packed["bh"])

    if return_packed:
        return out
    return out[:, :L], out[:, L:2 * L]


def init_encoder_params(key, input_dim, hidden_dim, latent_dim):
    """nn.Linear-style init (uniform +/- 1/sqrt(fan_in)); weights stored (in, out)."""
    def linear(k, fan_in, fan_out):
        kw, kb = jax.random.split(k)
        bound = 1.0 / float(jnp.sqrt(fan_in))
        w = jax.random.uniform(kw, (fan_in, fan_out), jnp.float32, -bound, bound)
        b = jax.random.uniform(kb, (1, fan_out), jnp.float32, -bound, bound)
        return w, b

    k1, k2, k3, k4 = jax.random.split(key, 4)
    w1, b1 = linear(k1, input_dim + 1, hidden_dim)
    w2, b2 = linear(k2, hidden_dim, hidden_dim)
    wmu, bmu = linear(k3, hidden_dim, latent_dim)
    wlv, blv = linear(k4, hidden_dim, latent_dim)
    return (w1, b1, w2, b2, wmu, bmu, wlv, blv)


def pack_encoder_params(params, input_dim, hidden_dim, latent_dim):
    """One-time packing: pad the (input_dim+1) rows of W1 to 8 sublanes (y row
    included), zero-pad feature dims to 128 lanes, fuse the mu/logvar heads
    into one slab, cast big weights to bf16."""
    w1, b1, w2, b2, wmu, bmu, wlv, blv = params
    IN_PAD = _round_up(input_dim + 1, 8)
    HPAD = _round_up(hidden_dim, 128)
    OPAD = _round_up(2 * latent_dim, 128)
    L = latent_dim
    f32 = jnp.float32

    w1p = jnp.zeros((IN_PAD, HPAD), f32).at[:input_dim + 1, :hidden_dim].set(w1)
    b1p = jnp.zeros((1, HPAD), f32).at[:, :hidden_dim].set(b1)
    w2p = jnp.zeros((HPAD, HPAD), f32).at[:hidden_dim, :hidden_dim].set(w2)
    b2p = jnp.zeros((1, HPAD), f32).at[:, :hidden_dim].set(b2)
    whp = (jnp.zeros((HPAD, OPAD), f32)
           .at[:hidden_dim, :L].set(wmu)
           .at[:hidden_dim, L:2 * L].set(wlv))
    bhp = (jnp.zeros((1, OPAD), f32)
           .at[:, :L].set(bmu)
           .at[:, L:2 * L].set(blv))

    return dict(
        w1=w1p.astype(jnp.bfloat16), b1=b1p,
        w2=w2p.astype(jnp.bfloat16), b2=b2p,
        wh=whp.astype(jnp.bfloat16), bh=bhp,
        in_pad=IN_PAD, hidden_pad=HPAD, out_pad=OPAD,
        input_dim=input_dim, latent_dim=latent_dim)


def encoder_reference(x, y, params):
    """Pure f32 reference mirroring the PyTorch forward exactly."""
    w1, b1, w2, b2, wmu, bmu, wlv, blv = params
    h = jnp.concatenate([x, y[:, None]], axis=1)
    h = jax.nn.relu(h @ w1 + b1)
    h = jax.nn.relu(h @ w2 + b2)
    return h @ wmu + bmu, h @ wlv + blv


def encoder_reference_bf16(x, y, packed):
    """Reference mirroring the kernel's bf16 weight/activation rounding."""
    f32 = jnp.float32
    B = x.shape[0]
    input_dim = packed["input_dim"]
    xy = (jnp.zeros((B, packed["in_pad"]), f32)
          .at[:, :input_dim].set(x.astype(f32))
          .at[:, input_dim].set(y.astype(f32)))
    xyb = xy.astype(jnp.bfloat16).astype(f32)
    h = jax.nn.relu(xyb @ packed["w1"].astype(f32) + packed["b1"])
    h = jax.nn.relu(h.astype(jnp.bfloat16).astype(f32) @ packed["w2"].astype(f32)
                    + packed["b2"])
    out = (h.astype(jnp.bfloat16).astype(f32) @ packed["wh"].astype(f32)
           + packed["bh"])
    L = packed["latent_dim"]
    return out[:, :L], out[:, L:2 * L]


if __name__ == "__main__":
    input_dim, hidden_dim, latent_dim = 4, 32, 8
    batch = 8

    key = jax.random.PRNGKey(0)
    kx, ky, kp = jax.random.split(key, 3)
    x = jax.random.normal(kx, (batch, input_dim), jnp.float32)
    y = jax.random.normal(ky, (batch,), jnp.float32)

    params = init_encoder_params(kp, input_dim, hidden_dim, latent_dim)
    packed = pack_encoder_params(params, input_dim, hidden_dim, latent_dim)

    mu, logvar = jax.block_until_ready(encoder_forward(x, y, packed))
    assert mu.shape == (batch, latent_dim) and logvar.shape == (batch, latent_dim)

    # Tight check vs a reference mirroring the kernel's bf16 rounding.
    mu_b, lv_b = encoder_reference_bf16(x, y, packed)
    assert jnp.allclose(mu, mu_b, atol=5e-3, rtol=5e-3)
    assert jnp.allclose(logvar, lv_b, atol=5e-3, rtol=5e-3)

    # Loose semantic check vs full-f32 PyTorch-equivalent math.
    mu_f, lv_f = encoder_reference(x, y, params)
    assert jnp.allclose(mu, mu_f, atol=5e-2, rtol=5e-2)
    assert jnp.allclose(logvar, lv_f, atol=5e-2, rtol=5e-2)

    print("KERNEL_OK")
</pallas_src>

<mosaic_0001>
module attributes {stable_mosaic.version = 11 : i64} {
  func.func @_encoder_kernel(%arg0: i32, %arg1: memref<8x8xf32, #tpu.memory_space<vmem>>, %arg2: memref<8x128xbf16, #tpu.memory_space<vmem>>, %arg3: memref<1x128xf32, #tpu.memory_space<vmem>>, %arg4: memref<128x128xbf16, #tpu.memory_space<vmem>>, %arg5: memref<1x128xf32, #tpu.memory_space<vmem>>, %arg6: memref<128x128xbf16, #tpu.memory_space<vmem>>, %arg7: memref<1x128xf32, #tpu.memory_space<vmem>>, %arg8: memref<8x128xf32, #tpu.memory_space<vmem>>) attributes {dimension_semantics = [#tpu.dimension_semantics<parallel>], iteration_bounds = array<i64: 1>, scalar_prefetch = 0 : i64, scratch_operands = 0 : i64, tpu.core_type = #tpu.core_type<tc>, window_params = [{transform_indices = @transform_0, window_bounds = array<i64: 8, 8>}, {pipeline_mode = #tpu.pipeline_mode<synchronous>, transform_indices = @transform_1, window_bounds = array<i64: 8, 128>}, {pipeline_mode = #tpu.pipeline_mode<synchronous>, transform_indices = @transform_2, window_bounds = array<i64: 1, 128>}, {pipeline_mode = #tpu.pipeline_mode<synchronous>, transform_indices = @transform_3, window_bounds = array<i64: 128, 128>}, {pipeline_mode = #tpu.pipeline_mode<synchronous>, transform_indices = @transform_4, window_bounds = array<i64: 1, 128>}, {pipeline_mode = #tpu.pipeline_mode<synchronous>, transform_indices = @transform_5, window_bounds = array<i64: 128, 128>}, {pipeline_mode = #tpu.pipeline_mode<synchronous>, transform_indices = @transform_6, window_bounds = array<i64: 1, 128>}, {transform_indices = @transform_7, window_bounds = array<i64: 8, 128>}]} {
    %c0 = arith.constant 0 : index
    %c0_0 = arith.constant 0 : index
    %0 = vector.load %arg2[%c0, %c0_0] : memref<8x128xbf16, #tpu.memory_space<vmem>>, vector<8x128xbf16>
    %c0_1 = arith.constant 0 : index
    %c0_2 = arith.constant 0 : index
    %1 = vector.load %arg3[%c0_1, %c0_2] : memref<1x128xf32, #tpu.memory_space<vmem>>, vector<1x128xf32>
    %c0_3 = arith.constant 0 : index
    %c0_4 = arith.constant 0 : index
    %2 = vector.load %arg4[%c0_3, %c0_4] : memref<128x128xbf16, #tpu.memory_space<vmem>>, vector<128x128xbf16>
    %c0_5 = arith.constant 0 : index
    %c0_6 = arith.constant 0 : index
    %3 = vector.load %arg5[%c0_5, %c0_6] : memref<1x128xf32, #tpu.memory_space<vmem>>, vector<1x128xf32>
    %c0_7 = arith.constant 0 : index
    %c0_8 = arith.constant 0 : index
    %4 = vector.load %arg6[%c0_7, %c0_8] : memref<128x128xbf16, #tpu.memory_space<vmem>>, vector<128x128xbf16>
    %c0_9 = arith.constant 0 : index
    %c0_10 = arith.constant 0 : index
    %5 = vector.load %arg7[%c0_9, %c0_10] : memref<1x128xf32, #tpu.memory_space<vmem>>, vector<1x128xf32>
    %c0_11 = arith.constant 0 : index
    %c0_12 = arith.constant 0 : index
    %6 = vector.load %arg1[%c0_11, %c0_12] : memref<8x8xf32, #tpu.memory_space<vmem>>, vector<8x8xf32>
    %7 = arith.truncf %6 : vector<8x8xf32> to vector<8x8xbf16>
    %cst = arith.constant dense<0.000000e+00> : vector<8x128xf32>
    %8 = tpu.matmul %7, %0, %cst {dimension_numbers = #tpu.dot_dimension_numbers<[1], [0], [0], [1], [0, 0, 1, 1], [], []>} : vector<8x8xbf16>, vector<8x128xbf16>, vector<8x128xf32> -> vector<8x128xf32>
    %9 = vector.broadcast %1 : vector<1x128xf32> to vector<8x128xf32>
    %10 = arith.addf %8, %9 : vector<8x128xf32>
    %cst_13 = arith.constant 0.000000e+00 : f32
    %11 = vector.broadcast %cst_13 : f32 to vector<8x128xf32>
    %12 = arith.maximumf %10, %11 : vector<8x128xf32>
    %13 = arith.truncf %12 : vector<8x128xf32> to vector<8x128xbf16>
    %cst_14 = arith.constant dense<0.000000e+00> : vector<8x128xf32>
    %14 = tpu.matmul %13, %2, %cst_14 {dimension_numbers = #tpu.dot_dimension_numbers<[1], [0], [0], [1], [0, 0, 1, 1], [], []>} : vector<8x128xbf16>, vector<128x128xbf16>, vector<8x128xf32> -> vector<8x128xf32>
    %15 = vector.broadcast %3 : vector<1x128xf32> to vector<8x128xf32>
    %16 = arith.addf %14, %15 : vector<8x128xf32>
    %cst_15 = arith.constant 0.000000e+00 : f32
    %17 = vector.broadcast %cst_15 : f32 to vector<8x128xf32>
    %18 = arith.maximumf %16, %17 : vector<8x128xf32>
    %19 = arith.truncf %18 : vector<8x128xf32> to vector<8x128xbf16>
    %cst_16 = arith.constant dense<0.000000e+00> : vector<8x128xf32>
    %20 = tpu.matmul %19, %4, %cst_16 {dimension_numbers = #tpu.dot_dimension_numbers<[1], [0], [0], [1], [0, 0, 1, 1], [], []>} : vector<8x128xbf16>, vector<128x128xbf16>, vector<8x128xf32> -> vector<8x128xf32>
    %21 = vector.broadcast %5 : vector<1x128xf32> to vector<8x128xf32>
    %22 = arith.addf %20, %21 : vector<8x128xf32>
    %c0_17 = arith.constant 0 : index
    %c0_18 = arith.constant 0 : index
    %23 = vector.load %arg8[%c0_17, %c0_18] : memref<8x128xf32, #tpu.memory_space<vmem>>, vector<8x128xf32>
    tpu.vector_store %arg8[%c0_17, %c0_18], %22 {strides = array<i32>} : memref<8x128xf32, #tpu.memory_space<vmem>>, vector<8x128xf32>,
    return
  }
  func.func @transform_0(%arg0: i32) -> (i32, i32) {
    %c0_i32 = arith.constant 0 : i32
    %c0_i32_0 = arith.constant 0 : i32
    return %arg0, %c0_i32 : i32, i32
  }
  func.func @transform_1(%arg0: i32) -> (i32, i32) {
    %c0_i32 = arith.constant 0 : i32
    %c0_i32_0 = arith.constant 0 : i32
    %c0_i32_1 = arith.constant 0 : i32
    return %c0_i32, %c0_i32_0 : i32, i32
  }
  func.func @transform_2(%arg0: i32) -> (i32, i32) {
    %c0_i32 = arith.constant 0 : i32
    %c0_i32_0 = arith.constant 0 : i32
    %c0_i32_1 = arith.constant 0 : i32
    return %c0_i32, %c0_i32_0 : i32, i32
  }
  func.func @transform_3(%arg0: i32) -> (i32, i32) {
    %c0_i32 = arith.constant 0 : i32
    %c0_i32_0 = arith.constant 0 : i32
    %c0_i32_1 = arith.constant 0 : i32
    return %c0_i32, %c0_i32_0 : i32, i32
  }
  func.func @transform_4(%arg0: i32) -> (i32, i32) {
    %c0_i32 = arith.constant 0 : i32
    %c0_i32_0 = arith.constant 0 : i32
    %c0_i32_1 = arith.constant 0 : i32
    return %c0_i32, %c0_i32_0 : i32, i32
  }
  func.func @transform_5(%arg0: i32) -> (i32, i32) {
    %c0_i32 = arith.constant 0 : i32
    %c0_i32_0 = arith.constant 0 : i32
    %c0_i32_1 = arith.constant 0 : i32
    return %c0_i32, %c0_i32_0 : i32, i32
  }
  func.func @transform_6(%arg0: i32) -> (i32, i32) {
    %c0_i32 = arith.constant 0 : i32
    %c0_i32_0 = arith.constant 0 : i32
    %c0_i32_1 = arith.constant 0 : i32
    return %c0_i32, %c0_i32_0 : i32, i32
  }
  func.func @transform_7(%arg0: i32) -> (i32, i32) {
    %c0_i32 = arith.constant 0 : i32
    %c0_i32_0 = arith.constant 0 : i32
    return %arg0, %c0_i32 : i32, i32
  }
}

</mosaic_0001>

<bundles_post_ra>
// kernel: tpu_custom_call.1
= control target key start
LH: loop header
LB: loop body
LE: loop exit
PB: predicated region body
PF: predicated region fallthrough
CT: control target
= control target key end

     0   :  { %12 = vsyncpa [#allocation3], 0  ;;  %s591_s0 = inlined_call_operand.hbm [shape: f32[8,8], index: 0, kind: input, shape index: {}]   ;;  %s592_s1 = inlined_call_operand.hbm [shape: bf16[8,128], index: 1, kind: input, shape index: {}]   ;;  %s593_s2 = inlined_call_operand.vmem [shape: f32[1,128], index: 2, kind: input, shape index: {}]   ;;  %s594_s3 = inlined_call_operand.hbm [shape: bf16[128,128], index: 3, kind: input, shape index: {}]   ;;  %s595_s4 = inlined_call_operand.vmem [shape: f32[1,128], index: 4, kind: input, shape index: {}]   ;;  %s596_s5 = inlined_call_operand.hbm [shape: bf16[128,128], index: 5, kind: input, shape index: {}]   ;;  %s597_s6 = inlined_call_operand.vmem [shape: f32[1,128], index: 6, kind: input, shape index: {}]   ;;  %s598_s7 = inlined_call_operand.hbm [shape: f32[8,128], index: 7, kind: output, shape index: {}]  }
   0x1   :  { %13 = vsyncpa [#allocation6], 0 }
   0x2   :  { %14 = vsyncpa [#allocation9], 0  ;;  %s32_s26 = sshll.u32 %s592_s1, 4  ;;  %s33_s26 = int_to_ptr.hbm [resolvable:$true] %s32_s26 }
   0x3   :  { %15 = vsyncpa [#allocation4], 0  ;;  %s520_s27 = smov [#allocation5]   ;;  %s21_s8 = sshll.u32 %s591_s0, 4  ;;  %s22_s8 = int_to_ptr.hbm [resolvable:$true] %s21_s8 }
   0x4   :  { %s34_s28 = sshll.u32 %s520_s27, 4  ;;  %s521_s9 = smov [#allocation2]   ;;  %s35_s28 = int_to_ptr.vmem [resolvable:$true] %s34_s28 }
   0x5   :  { %37 = dma.hbm_to_vmem [thread:$0]  %s33_s26, 64, %s35_s28, [#allocation6]  }
   0x6   :  { %s23_s10 = sshll.u32 %s521_s9, 4  ;;  %s44_s13 = sshll.u32 %s594_s3, 4  ;;  %s24_s10 = int_to_ptr.vmem [resolvable:$true] %s23_s10  ;;  %s45_s13 = int_to_ptr.hbm [resolvable:$true] %s44_s13 }
   0x7   :  { %26 = dma.hbm_to_vmem [thread:$0]  %s22_s8, 128, %s24_s10, [#allocation3]  }
   0x8   :  { %s522_s1 = smov [#allocation7]   ;;  %s59_s17 = sshll.u32 %s596_s5, 4  ;;  %s60_s17 = int_to_ptr.hbm [resolvable:$true] %s59_s17 }
   0x9   :  { %s46_s14 = sshll.u32 %s522_s1, 4  ;;  %s523_s18 = smov 64   ;;  %s47_s14 = int_to_ptr.vmem [resolvable:$true] %s46_s14 }
   0xa   :  { %s524_s0 = smov 4   ;;  %s525_s19 = smov [#allocation8]  }
   0xb   :  { %52 = dma.hbm_to_vmem [thread:$0]  %s45_s13, 1024, %s47_s14, [#allocation6], %s523_s18, %s523_s18, %s524_s0  }
   0xc   :  { %s61_s20 = sshll.u32 %s525_s19, 4  ;;  %s62_s20 = int_to_ptr.vmem [resolvable:$true] %s61_s20 }
   0xd   :  { %67 = dma.hbm_to_vmem [thread:$0]  %s60_s17, 1024, %s62_s20, [#allocation9], %s523_s18, %s523_s18, %s524_s0  }
   0xe   :  { %512 = dma.done.wait [#allocation3], 128  }
   0xf   :  { %513 = vsyncadd [#allocation3], 4294967168 }
  0x10   :  { %514 = dma.done.wait [#allocation6], 1088  }
  0x11   :  { %515 = vsyncadd [#allocation6], 4294966208 }
  0x12   :  { %516 = dma.done.wait [#allocation9], 1024  }
  0x13   :  { %517 = vsyncadd [#allocation9], 4294966272  ;;  %vm132_vm0 = vcmask 1043456   ;;  %v87_v0 = vld [vmem:[#allocation5] sm:$0xf]  ;;  %v123_v1 = vld [vmem:[#allocation2] sm:$0xff] }
  0x14   :  { %v373_v2 = vld [vmem:[#allocation7 + $0x38] sm:$0xff]  ;;  %v134_v3 = vsel %vm132_vm0, %v87_v0, 0  ;;  %v124_v4 = vpack.c.bf16 %v123_v1, %v123_v1  ;;  %vm128_vm1 = vcmask 64512   ;;  %v372_v5 = vld [vmem:[#allocation7 + $0x30] sm:$0xff]  ;;  %v371_v6 = vld [vmem:[#allocation7 + $0x28] sm:$0xff]  ;;  %s526_s24 = smov [#allocation10]  }
  0x15   :  { %143 = vmatpush.bf16.msra.mxu0 %v134_v3  ;;  %202 = vmatpush.bf16.msra.mxu1 %v373_v2  ;;  %v370_v7 = vld [vmem:[#allocation7 + $0x20] sm:$0xff]  ;;  %v369_v8 = vld [vmem:[#allocation7 + $0x18] sm:$0xff]  ;;  %v368_v9 = vld [vmem:[#allocation7 + $0x10] sm:$0xff]  ;;  %s287_s25 = sshll.u32 %s526_s24, 4  ;;  %s289_s28 = sshll.u32 %s598_s7, 4  ;;  %s288_s25 = int_to_ptr.vmem [resolvable:$true] %s287_s25  ;;  %s290_s28 = int_to_ptr.hbm [resolvable:$true] %s289_s28 }
  0x16   :  { %v367_v10 = vld [vmem:[#allocation7 + $0x8] sm:$0xff]  ;;  %v366_v11 = vld [vmem:[#allocation7] sm:$0xff]  ;;  %v381_v12 = vld [vmem:[#allocation8 + $0x38] sm:$0xff] }
  0x17   :  { %268 = vmatpush.bf16.msra.mxu2 %v381_v12  ;;  %v380_v13 = vld [vmem:[#allocation8 + $0x30] sm:$0xff]  ;;  %v379_v14 = vld [vmem:[#allocation8 + $0x28] sm:$0xff]  ;;  %v378_v15 = vld [vmem:[#allocation8 + $0x20] sm:$0xff] }
  0x18   :  { %301 = vmatmul.msk.bf16.vlgmr.msra.gmra.mxu0 %vm128_vm1, %v124_v4  ;;  %v377_v16 = vld [vmem:[#allocation8 + $0x18] sm:$0xff]  ;;  %v376_v17 = vld [vmem:[#allocation8 + $0x10] sm:$0xff]  ;;  %v375_v24 = vld [vmem:[#allocation8 + $0x8] sm:$0xff] }
  0x19   :  { %203 = vmatpush.bf16.msra.mxu1 %v372_v5  ;;  %v389_v18 = vld [vmem:[%s593_s2] ss:$0 sm:$0xff]  ;;  %v374_v25 = vld [vmem:[#allocation8] sm:$0xff] }
  0x1a   :  { %v390_v26 = vld [vmem:[%s595_s4] ss:$0 sm:$0xff] }
  0x1b   :  { %269 = vmatpush.bf16.msra.mxu2 %v380_v13  ;;  %v391_v32 = vld [vmem:[%s597_s6] ss:$0 sm:$0xff] }
  0x1d   :  { %204 = vmatpush.bf16.msra.mxu1 %v371_v6 }
  0x1f   :  { %270 = vmatpush.bf16.msra.mxu2 %v379_v14 }
  0x21   :  { %205 = vmatpush.bf16.msra.mxu1 %v370_v7 }
  0x23   :  { %271 = vmatpush.bf16.msra.mxu2 %v378_v15 }
  0x25   :  { %206 = vmatpush.bf16.msra.mxu1 %v369_v8 }
  0x27   :  { %272 = vmatpush.bf16.msra.mxu2 %v377_v16 }
  0x29   :  { %207 = vmatpush.bf16.msra.mxu1 %v368_v9 }
  0x2b   :  { %273 = vmatpush.bf16.msra.mxu2 %v376_v17 }
  0x2d   :  { %208 = vmatpush.bf16.msra.mxu1 %v367_v10 }
  0x2f   :  { %274 = vmatpush.bf16.msra.mxu2 %v375_v24 }
  0x31   :  { %209 = vmatpush.bf16.msra.mxu1 %v366_v11 }
  0x33   :  { %275 = vmatpush.bf16.msra.mxu2 %v374_v25 }
  0x95   :  { %v145_v19 = vpop.f32.mrf.mxu0 }
  0x96   :  { %v146_v20 = vadd.f32 %v389_v18, %v145_v19 }
  0x98   :  { %v149_v21 = vmax.f32 %v146_v20, 0.0 }
  0x9a   :  { %v150_v22 = vpack.c.bf16 %v149_v21, %v149_v21 }
  0x9c   :  { %210 = vmatmul.bf16.vlgmr.msra.gmra.mxu1 %v150_v22 }
  0x9d   :  { %v147_v23 = vpop.f32.mrf.mxu0 }
 0x119   :  { %v211_v27 = vpop.f32.mrf.mxu1 }
 0x11a   :  { %v212_v28 = vadd.f32 %v390_v26, %v211_v27 }
 0x11c   :  { %v215_v29 = vmax.f32 %v212_v28, 0.0 }
 0x11e   :  { %v216_v30 = vpack.c.bf16 %v215_v29, %v215_v29 }
 0x120   :  { %276 = vmatmul.bf16.vlgmr.msra.gmra.mxu2 %v216_v30 }
 0x121   :  { %v213_v31 = vpop.f32.mrf.mxu1 }
 0x1a3   :  { %v277_v33 = vpop.f32.mrf.mxu2 }
 0x1a4   :  { %v278_v34 = vadd.f32 %v391_v32, %v277_v33 }
 0x1a6   :  { %281 = vst [vmem:[#allocation10] sm:$0xff] %v278_v34 }
 0x1a7   :  { %292 = dma.vmem_to_hbm [thread:$0]  %s288_s25, 128, %s290_s28, [#allocation4]  }
 0x1ab   :  { %v279_v35 = vpop.f32.mrf.mxu2 }
 0x1ac   :  { %518 = dma.done.wait [#allocation4], 128  }
 0x1ad   :  { %519 = vsyncadd [#allocation4], 4294967168 }
 0x1ae   :  { %297 = vsyncpa [#allocation3], 1 }
 0x1af   :  { %298 = vsyncpa [#allocation6], 1 }
 0x1b0   :  { %299 = vsyncpa [#allocation9], 1 }
 0x1b1   :  { %300 = vsyncpa [#allocation4], 1 }

</bundles_post_ra>
